<compile_context>
chip_gen: v6e
topology: v6e:2x2x1
jax: 0.10.0
libtpu: 0.0.40
codegen_flags: <defaults>
</compile_context>

<pallas_src>
import numpy as np
import jax
import jax.numpy as jnp
from jax.experimental import pallas as pl
from jax.experimental.pallas import tpu as pltpu

PAD = 0  # Offsets.PAD


def _round_up(x, m):
    return (x + m - 1) // m * m


# ----------------------------------------------------------------------------
# Pallas kernel: ParallelConv (im2col matmul + max-over-time + tanh)
#                followed by SkipConnection gating, on a block of words.
# ----------------------------------------------------------------------------
def _make_charconv_kernel(filtsz, t_outs, t_pad, max_pad, dsz, k_pads, f_pad,
                          num_gates):
    n_filters = len(filtsz)

    def kernel(*refs):
        x_ref = refs[0]                                           # (BN, W_in, D) bf16
        conv_w = refs[1:1 + n_filters]                            # (K_pad, F_pad) bf16
        conv_b = refs[1 + n_filters:1 + 2 * n_filters]            # (1, F_pad)     f32
        gate_w = refs[1 + 2 * n_filters:1 + 2 * n_filters + num_gates]
        gate_b = refs[1 + 2 * n_filters + num_gates:1 + 2 * n_filters + 2 * num_gates]
        out_ref = refs[-1]                                        # (BN, F_pad)    f32

        x = x_ref[...]                                            # already zero-padded chars
        bn = x.shape[0]

        mots = None
        for i, fsz in enumerate(filtsz):
            pad = fsz // 2
            t_out = t_outs[i]
            start = max_pad - pad                                 # static, >= 0
            # im2col: per-tap sublane-offset slices, lane concat, one matmul.
            taps = [x[:, start + k:start + k + t_pad, :] for k in range(fsz)]
            k_extra = k_pads[i] - fsz * dsz
            if k_extra:                                           # pad K to 128 (MXU fill)
                taps.append(jnp.zeros((bn, t_pad, k_extra), x.dtype))
            patches = jnp.concatenate(taps, axis=-1).reshape(bn * t_pad, k_pads[i])
            conv = jnp.dot(patches, conv_w[i][...],               # NO bias here
                           preferred_element_type=jnp.float32)    # f32 accumulate
            conv = conv.reshape(bn, t_pad, f_pad)                 # t_pad % 8 == 0 -> free
            if t_out < t_pad:
                # padded time rows see real chars through the conv window; they
                # do not exist in the PyTorch output -> exclude them from max.
                t_idx = jax.lax.broadcasted_iota(jnp.int32, (t_pad, f_pad), 0)
                conv = jnp.where(t_idx[None] < t_out, conv, jnp.float32(-1e30))
            m = jnp.max(conv, axis=1)                             # max BEFORE bias/tanh
            # tanh is monotonic & bias constant per column -> exact reorder;
            # only (bn, f_pad) transcendentals instead of (bn*t_out, f_pad).
            feat = jnp.tanh(m + conv_b[i][...])
            # per-filter column ranges disjoint, padded cols stay exactly 0,
            # so summing == concatenation.
            mots = feat if mots is None else mots + feat

        h = mots
        for j in range(num_gates):                                # SkipConnection gates
            g = jnp.dot(h.astype(gate_w[j].dtype), gate_w[j][...],
                        preferred_element_type=jnp.float32) + gate_b[j][...]
            h = h + jax.nn.relu(g)

        out_ref[...] = h                                          # lane-dense store

    return kernel


def char_conv_gated(char_vecs, conv_ws, conv_bs, gate_ws, gate_bs, *,
                    filtsz, t_outs, t_pad, max_pad, k_pads, f_pad, block_n):
    """char_vecs: (N, W_in, D) bf16 (char axis pre-padded) -> (N, F_pad) f32."""
    n, w_in, dsz = char_vecs.shape
    num_gates = len(gate_ws)
    grid = (pl.cdiv(n, block_n),)   # n is already a multiple of block_n

    kernel = _make_charconv_kernel(tuple(filtsz), tuple(t_outs), t_pad, max_pad,
                                   dsz, tuple(k_pads), f_pad, num_gates)

    def const2d(arr):
        # Constant index_map (weights resident across all grid steps). For very
        # large F configs, pipeline_mode=pl.Buffered(1) would halve their VMEM.
        return pl.BlockSpec(arr.shape, lambda i: (0, 0))

    in_specs = [pl.BlockSpec((block_n, w_in, dsz), lambda i: (i, 0, 0))]
    in_specs += [const2d(w) for w in conv_ws]
    in_specs += [const2d(b) for b in conv_bs]
    in_specs += [const2d(w) for w in gate_ws]
    in_specs += [const2d(b) for b in gate_bs]

    return pl.pallas_call(
        kernel,
        out_shape=jax.ShapeDtypeStruct((n, f_pad), jnp.float32),
        grid_spec=pltpu.PrefetchScalarGridSpec(
            num_scalar_prefetch=0,
            grid=grid,
            in_specs=in_specs,
            out_specs=pl.BlockSpec((block_n, f_pad), lambda i: (i, 0)),  # lane-dense
        ),
        compiler_params=pltpu.CompilerParams(
            dimension_semantics=("parallel",)),                   # megacore / 2-TC split
    )(char_vecs, *conv_ws, *conv_bs, *gate_ws, *gate_bs)


# ----------------------------------------------------------------------------
# Parameter init (deterministic, synthetic -- mirrors PyTorch layouts/shapes)
# ----------------------------------------------------------------------------
def init_params(key, vsz, dsz, filtsz, nfeats, num_gates):
    F = int(sum(nfeats))
    n_keys = 1 + 2 * len(filtsz) + 2 * num_gates
    ks = list(jax.random.split(key, n_keys))

    def u(k, shape, b):
        return jax.random.uniform(k, shape, jnp.float32, -b, b)

    embed = u(ks.pop(), (vsz, dsz), 0.1).at[PAD].set(0.0)  # padding_idx row is zero

    conv_w, conv_b = [], []
    for fsz, nf in zip(filtsz, nfeats):
        bound = 1.0 / float(np.sqrt(dsz * fsz))
        conv_w.append(u(ks.pop(), (nf, dsz, fsz), bound))   # Conv1d layout (out, in, k)
        conv_b.append(u(ks.pop(), (nf,), bound))

    gate_w, gate_b = [], []
    bound = 1.0 / float(np.sqrt(F))
    for _ in range(num_gates):
        gate_w.append(u(ks.pop(), (F, F), bound))           # Linear layout (out, in)
        gate_b.append(u(ks.pop(), (F,), bound))

    return {"embed": embed, "conv_w": conv_w, "conv_b": conv_b,
            "gate_w": gate_w, "gate_b": gate_b}


def pack_kernel_params(params, filtsz, nfeats, f_pad, k_pads):
    """Transpose / zero-pad the PyTorch-layout weights into lane-dense kernel
    operands. Zero padding is exact: padded conv K-rows/F-cols contribute 0,
    max over real rows of an all-zero column is 0, tanh(0+0)=0, and padded
    gate rows/cols contribute 0."""
    dsz = params["embed"].shape[1]
    offs = np.concatenate([[0], np.cumsum(nfeats)]).astype(int)

    conv_ws, conv_bs = [], []
    for i, fsz in enumerate(filtsz):
        nf = int(nfeats[i])
        w = params["conv_w"][i]                               # (nf, D, fsz)
        # im2col row layout [tap0 | tap1 | ...] (each D wide): W[k*D+d, c] = w[c, d, k]
        w_mat = jnp.transpose(w, (2, 1, 0)).reshape(fsz * dsz, nf)
        w_full = jnp.zeros((k_pads[i], f_pad), jnp.float32)
        w_full = w_full.at[:fsz * dsz, offs[i]:offs[i] + nf].set(w_mat)
        b_full = jnp.zeros((1, f_pad), jnp.float32)
        b_full = b_full.at[0, offs[i]:offs[i] + nf].set(params["conv_b"][i])
        conv_ws.append(w_full.astype(jnp.bfloat16))           # bf16 MXU operand
        conv_bs.append(b_full)                                 # bias stays f32

    F = int(offs[-1])
    gate_ws, gate_bs = [], []
    for wg, bg in zip(params["gate_w"], params["gate_b"]):
        wg_full = jnp.zeros((f_pad, f_pad), jnp.float32).at[:F, :F].set(wg.T)
        bg_full = jnp.zeros((1, f_pad), jnp.float32).at[0, :F].set(bg)
        gate_ws.append(wg_full.astype(jnp.bfloat16))
        gate_bs.append(bg_full)
    return conv_ws, conv_bs, gate_ws, gate_bs


# ----------------------------------------------------------------------------
# CharConvEmbeddings.forward
# ----------------------------------------------------------------------------
def char_conv_embeddings_forward(xch, params, *, filtsz, nfeats, num_gates=1,
                                 block_n=256):
    b, t, n_chars = xch.shape
    dsz = params["embed"].shape[1]
    conv_outsz = int(sum(nfeats))
    f_pad = _round_up(conv_outsz, 128)

    # Static conv geometry (PyTorch Conv1d with padding=fsz//2).
    pads = [f // 2 for f in filtsz]
    t_outs = [n_chars + 2 * p - f + 1 for f, p in zip(filtsz, pads)]
    max_pad = max(pads)
    t_pad = _round_up(max(t_outs), 8)                      # sublane-aligned time axis
    right = max(f - 1 - p for f, p in zip(filtsz, pads))   # extra right padding needed
    w_in = _round_up(max_pad + t_pad + right, 8)
    k_pads = [_round_up(f * dsz, 128) for f in filtsz]     # MXU-friendly K

    n = b * t
    # Keep blocks large (amortize per-step cost, fill MXU M) but guarantee a
    # grid of >= 2 steps when possible so both v7x TensorCores get work.
    block_n = max(8, min(block_n, _round_up(pl.cdiv(n, 2), 8)))
    n_pad = _round_up(n, block_n)

    # Pad char ids instead of padded embeddings: PAD id -> zero embedding row,
    # so both the row padding (extra words) and the conv 'same' padding of the
    # char axis come out of the single gather (no extra HBM pass, no in-kernel
    # concat of a zero-padded x block).
    flat = xch.reshape(n, n_chars).astype(jnp.int32)
    flat = jnp.pad(flat, ((0, n_pad - n), (max_pad, w_in - max_pad - n_chars)),
                   constant_values=PAD)

    # Cast the table to bf16 once, then gather (halves the (N,W,D) HBM bytes).
    embed_bf16 = params["embed"].astype(jnp.bfloat16).at[PAD].set(0.0)
    char_vecs = jnp.take(embed_bf16, flat, axis=0)         # (n_pad, w_in, D) bf16

    conv_ws, conv_bs, gate_ws, gate_bs = pack_kernel_params(
        params, filtsz, nfeats, f_pad, k_pads)
    out = char_conv_gated(char_vecs, conv_ws, conv_bs, gate_ws, gate_bs,
                          filtsz=filtsz, t_outs=t_outs, t_pad=t_pad,
                          max_pad=max_pad, k_pads=k_pads, f_pad=f_pad,
                          block_n=block_n)
    # TODO(synk): projsz > 0 projection (extra Linear) not exercised; module
    # default projsz=0 skips it. pdrop/dropin dropout inactive at eval.
    return out[:n, :conv_outsz].reshape(b, t, conv_outsz)


# ----------------------------------------------------------------------------
# Pure-JAX f32 reference (same math, no Pallas) for a correctness check
# ----------------------------------------------------------------------------
def reference_forward(xch, params, *, filtsz, nfeats, num_gates=1):
    b, t, n_chars = xch.shape
    flat = xch.reshape(b * t, n_chars)
    x = jnp.take(params["embed"], flat, axis=0)               # (N, W, D) f32
    mots = []
    for i, fsz in enumerate(filtsz):
        pad = fsz // 2
        t_out = n_chars + 2 * pad - fsz + 1
        xp = jnp.pad(x, ((0, 0), (pad, pad), (0, 0)))
        w = params["conv_w"][i]                               # (nf, D, fsz)
        conv = sum(jnp.einsum("ntd,cd->ntc", xp[:, k:k + t_out, :], w[:, :, k])
                   for k in range(fsz)) + params["conv_b"][i]
        mots.append(jnp.max(jnp.tanh(conv), axis=1))
    h = jnp.concatenate(mots, axis=-1)
    for j in range(num_gates):                                # SkipConnection
        h = h + jax.nn.relu(h @ params["gate_w"][j].T + params["gate_b"][j])
    return h.reshape(b, t, -1)


if __name__ == "__main__":
    # Module defaults: cfiltsz=[3], activation='tanh', gating='skip',
    # num_gates=1, projsz=0.  Wc=10 deliberately not a multiple of 8 so the
    # padded-time-row masking (required by the max-before-tanh reorder) is
    # exercised against the reference.
    B, T, Wc = 2, 8, 10           # batch, seq, max word length (chars)
    vsz, dsz = 100, 32
    filtsz, nfeats = [3], [30]
    num_gates = 1

    key = jax.random.PRNGKey(0)
    k_param, k_ids, k_len = jax.random.split(key, 3)

    params = init_params(k_param, vsz, dsz, filtsz, nfeats, num_gates)

    ids = jax.random.randint(k_ids, (B, T, Wc), 1, vsz)
    word_lens = jax.random.randint(k_len, (B, T), 0, Wc + 1)   # include all-PAD words
    pos = jnp.arange(Wc)
    xch = jnp.where(pos[None, None, :] < word_lens[..., None], ids, PAD).astype(jnp.int32)

    out = char_conv_embeddings_forward(xch, params, filtsz=filtsz,
                                       nfeats=nfeats, num_gates=num_gates)
    out = jax.block_until_ready(out)

    ref = reference_forward(xch, params, filtsz=filtsz, nfeats=nfeats,
                            num_gates=num_gates)
    assert out.shape == (B, T, sum(nfeats)), out.shape
    # bf16 matmul operands (f32 accumulation) in the kernel -> loose tolerance
    assert bool(jnp.allclose(out, ref, atol=2e-2, rtol=2e-2)), \
        float(jnp.max(jnp.abs(out - ref)))
    print("KERNEL_OK")
</pallas_src>

<mosaic_0001>
module attributes {stable_mosaic.version = 11 : i64} {
  func.func @kernel(%arg0: i32, %arg1: memref<8x24x32xbf16, #tpu.memory_space<vmem>>, %arg2: memref<128x128xbf16, #tpu.memory_space<vmem>>, %arg3: memref<1x128xf32, #tpu.memory_space<vmem>>, %arg4: memref<128x128xbf16, #tpu.memory_space<vmem>>, %arg5: memref<1x128xf32, #tpu.memory_space<vmem>>, %arg6: memref<8x128xf32, #tpu.memory_space<vmem>>) attributes {dimension_semantics = [#tpu.dimension_semantics<parallel>], iteration_bounds = array<i64: 2>, scalar_prefetch = 0 : i64, scratch_operands = 0 : i64, tpu.core_type = #tpu.core_type<tc>, window_params = [{transform_indices = @transform_0, window_bounds = array<i64: 8, 24, 32>}, {pipeline_mode = #tpu.pipeline_mode<synchronous>, transform_indices = @transform_1, window_bounds = array<i64: 128, 128>}, {pipeline_mode = #tpu.pipeline_mode<synchronous>, transform_indices = @transform_2, window_bounds = array<i64: 1, 128>}, {pipeline_mode = #tpu.pipeline_mode<synchronous>, transform_indices = @transform_3, window_bounds = array<i64: 128, 128>}, {pipeline_mode = #tpu.pipeline_mode<synchronous>, transform_indices = @transform_4, window_bounds = array<i64: 1, 128>}, {transform_indices = @transform_5, window_bounds = array<i64: 8, 128>}]} {
    %c0 = arith.constant 0 : index
    %c0_0 = arith.constant 0 : index
    %c0_1 = arith.constant 0 : index
    %0 = vector.load %arg1[%c0, %c0_0, %c0_1] : memref<8x24x32xbf16, #tpu.memory_space<vmem>>, vector<8x24x32xbf16>
    %1 = vector.extract_strided_slice %0 {offsets = [0, 0, 0], sizes = [8, 16, 32], strides = [1, 1, 1]} : vector<8x24x32xbf16> to vector<8x16x32xbf16>
    %2 = vector.extract_strided_slice %0 {offsets = [0, 1, 0], sizes = [8, 16, 32], strides = [1, 1, 1]} : vector<8x24x32xbf16> to vector<8x16x32xbf16>
    %3 = vector.extract_strided_slice %0 {offsets = [0, 2, 0], sizes = [8, 16, 32], strides = [1, 1, 1]} : vector<8x24x32xbf16> to vector<8x16x32xbf16>
    %cst = arith.constant 0.000000e+00 : bf16
    %4 = vector.broadcast %cst : bf16 to vector<8x16x32xbf16>
    %5 = tpu.concatenate %1, %2, %3, %4 in 2 : vector<8x16x32xbf16>, vector<8x16x32xbf16>, vector<8x16x32xbf16>, vector<8x16x32xbf16> -> vector<8x16x128xbf16>
    %6 = vector.shape_cast %5 : vector<8x16x128xbf16> to vector<128x128xbf16>
    %c0_2 = arith.constant 0 : index
    %c0_3 = arith.constant 0 : index
    %7 = vector.load %arg2[%c0_2, %c0_3] : memref<128x128xbf16, #tpu.memory_space<vmem>>, vector<128x128xbf16>
    %cst_4 = arith.constant dense<0.000000e+00> : vector<128x128xf32>
    %8 = tpu.matmul %6, %7, %cst_4 {dimension_numbers = #tpu.dot_dimension_numbers<[1], [0], [0], [1], [0, 0, 1, 1], [], []>} : vector<128x128xbf16>, vector<128x128xbf16>, vector<128x128xf32> -> vector<128x128xf32>
    %9 = vector.shape_cast %8 : vector<128x128xf32> to vector<8x16x128xf32>
    %10 = tpu.iota {dimensions = array<i32: 0>} : vector<16x128xi32>
    %11 = vector.shape_cast %10 : vector<16x128xi32> to vector<1x16x128xi32>
    %c10_i32 = arith.constant 10 : i32
    %12 = vector.broadcast %c10_i32 : i32 to vector<1x16x128xi32>
    %13 = arith.cmpi slt, %11, %12 : vector<1x16x128xi32>
    %cst_5 = arith.constant -1.000000e+30 : f32
    %14 = vector.shape_cast %13 : vector<1x16x128xi1> to vector<1x16x128xi1>
    %15 = vector.broadcast %14 : vector<1x16x128xi1> to vector<8x16x128xi1>
    %16 = vector.broadcast %cst_5 : f32 to vector<8x16x128xf32>
    %17 = arith.select %15, %9, %16 : vector<8x16x128xi1>, vector<8x16x128xf32>
    %cst_6 = arith.constant dense<0xFF800000> : vector<8x128xf32>
    %18 = vector.multi_reduction <maximumf>, %17, %cst_6 [1] : vector<8x16x128xf32> to vector<8x128xf32>
    %c0_7 = arith.constant 0 : index
    %c0_8 = arith.constant 0 : index
    %19 = vector.load %arg3[%c0_7, %c0_8] : memref<1x128xf32, #tpu.memory_space<vmem>>, vector<1x128xf32>
    %20 = vector.broadcast %19 : vector<1x128xf32> to vector<8x128xf32>
    %21 = arith.addf %18, %20 : vector<8x128xf32>
    %22 = math.tanh %21 : vector<8x128xf32>
    %23 = arith.truncf %22 : vector<8x128xf32> to vector<8x128xbf16>
    %c0_9 = arith.constant 0 : index
    %c0_10 = arith.constant 0 : index
    %24 = vector.load %arg4[%c0_9, %c0_10] : memref<128x128xbf16, #tpu.memory_space<vmem>>, vector<128x128xbf16>
    %cst_11 = arith.constant dense<0.000000e+00> : vector<8x128xf32>
    %25 = tpu.matmul %23, %24, %cst_11 {dimension_numbers = #tpu.dot_dimension_numbers<[1], [0], [0], [1], [0, 0, 1, 1], [], []>} : vector<8x128xbf16>, vector<128x128xbf16>, vector<8x128xf32> -> vector<8x128xf32>
    %c0_12 = arith.constant 0 : index
    %c0_13 = arith.constant 0 : index
    %26 = vector.load %arg5[%c0_12, %c0_13] : memref<1x128xf32, #tpu.memory_space<vmem>>, vector<1x128xf32>
    %27 = vector.broadcast %26 : vector<1x128xf32> to vector<8x128xf32>
    %28 = arith.addf %25, %27 : vector<8x128xf32>
    %cst_14 = arith.constant 0.000000e+00 : f32
    %29 = vector.broadcast %cst_14 : f32 to vector<8x128xf32>
    %30 = arith.maximumf %28, %29 : vector<8x128xf32>
    %31 = arith.addf %22, %30 : vector<8x128xf32>
    %c0_15 = arith.constant 0 : index
    %c0_16 = arith.constant 0 : index
    %32 = vector.load %arg6[%c0_15, %c0_16] : memref<8x128xf32, #tpu.memory_space<vmem>>, vector<8x128xf32>
    tpu.vector_store %arg6[%c0_15, %c0_16], %31 {strides = array<i32>} : memref<8x128xf32, #tpu.memory_space<vmem>>, vector<8x128xf32>,
    return
  }
  func.func @transform_0(%arg0: i32) -> (i32, i32, i32) {
    %c0_i32 = arith.constant 0 : i32
    %c0_i32_0 = arith.constant 0 : i32
    %c0_i32_1 = arith.constant 0 : i32
    return %arg0, %c0_i32, %c0_i32_0 : i32, i32, i32
  }
  func.func @transform_1(%arg0: i32) -> (i32, i32) {
    %c0_i32 = arith.constant 0 : i32
    %c0_i32_0 = arith.constant 0 : i32
    %c0_i32_1 = arith.constant 0 : i32
    return %c0_i32, %c0_i32_0 : i32, i32
  }
  func.func @transform_2(%arg0: i32) -> (i32, i32) {
    %c0_i32 = arith.constant 0 : i32
    %c0_i32_0 = arith.constant 0 : i32
    %c0_i32_1 = arith.constant 0 : i32
    return %c0_i32, %c0_i32_0 : i32, i32
  }
  func.func @transform_3(%arg0: i32) -> (i32, i32) {
    %c0_i32 = arith.constant 0 : i32
    %c0_i32_0 = arith.constant 0 : i32
    %c0_i32_1 = arith.constant 0 : i32
    return %c0_i32, %c0_i32_0 : i32, i32
  }
  func.func @transform_4(%arg0: i32) -> (i32, i32) {
    %c0_i32 = arith.constant 0 : i32
    %c0_i32_0 = arith.constant 0 : i32
    %c0_i32_1 = arith.constant 0 : i32
    return %c0_i32, %c0_i32_0 : i32, i32
  }
  func.func @transform_5(%arg0: i32) -> (i32, i32) {
    %c0_i32 = arith.constant 0 : i32
    %c0_i32_0 = arith.constant 0 : i32
    return %arg0, %c0_i32 : i32, i32
  }
}

</mosaic_0001>

<bundles_post_ra>
// kernel: tpu_custom_call.1
= control target key start
LH: loop header
LB: loop body
LE: loop exit
PB: predicated region body
PF: predicated region fallthrough
CT: control target
= control target key end

     0   :  { %10 = vsyncpa [#allocation3], 0  ;;  %s1959_s0 = inlined_call_operand.hbm [shape: bf16[16,24,32], index: 0, kind: input, shape index: {}]   ;;  %s1960_s1 = inlined_call_operand.hbm [shape: bf16[128,128], index: 1, kind: input, shape index: {}]   ;;  %s1961_s2 = inlined_call_operand.vmem [shape: f32[1,128], index: 2, kind: input, shape index: {}]   ;;  %s1962_s3 = inlined_call_operand.hbm [shape: bf16[128,128], index: 3, kind: input, shape index: {}]   ;;  %s1963_s4 = inlined_call_operand.vmem [shape: f32[1,128], index: 4, kind: input, shape index: {}]   ;;  %s1964_s5 = inlined_call_operand.hbm [shape: f32[16,128], index: 5, kind: output, shape index: {}]  }
   0x1   :  { %12 = vsyncpa [#allocation3 + $0x1], 0 }
   0x2   :  { %13 = vsyncpa [#allocation6], 0 }
   0x3   :  { %14 = vsyncpa [#allocation4], 0 }
   0x4   :  { %16 = vsyncpa [#allocation4 + $0x1], 0  ;;  %s1593_s18 = smov 0   ;;  %s1595_s19 = smov 0  }
   0x5   :  { %s1597_s20 = smov 0   ;;  %s1599_s21 = smov 0  }
   0x6 LB: > { %s1614_s22 = sadd.s32 4294967295, %s1551_s21   ;;  %s1144_s23 = sadd.s32 4294967294, %s1551_s21   ;;  %s1551_s21 = sphi %s1599_s21, %s1987_s21   ;;  %s1547_s20 = sphi %s1597_s20, %s1986_s20   ;;  %s1543_s19 = sphi %s1595_s19, %s1985_s19   ;;  %s1539_s18 = sphi %s1593_s18, %s1984_s18  }
   0x7   : > { %p42_p0 = scmp.ne.s32.totalorder %s1543_s19, %s1539_s18  ;;  %p1966_p1 = scmp.eq.s32.totalorder %s1614_s22, 0 }
   0x8   : > { %p150_p2 = scmp.eq.s32.totalorder %s1614_s22, 1  ;;  %p156_p3 = scmp.eq.s32.totalorder %s1144_s23, 1 }
   0x9   : > { %p1623_p4 = por %p1966_p1, %p42_p0  ;;  %p1145_p5 = scmp.ge.s32.totalorder %s1551_s21, 1 }
   0xa   : > { %p1628_p6 = por %p156_p3, %p42_p0  ;;  %p163_p7 = scmp.lt.s32.totalorder %s1551_s21, 3 }
   0xb   : > { %s1970_s24 = scalar_select %p1623_p4, 1, 0 }
   0xc   : > { %s1971_s25 = scalar_select %p1628_p6, 1, 0 }
   0xd   : > { %p1633_p8 = pnand %p1145_p5, %p163_p7  ;;  %s1553_s27 = smov [#allocation5]  }
   0xe   : > { %s175_s28 = sshll.u32 %s1553_s27, 4  ;;  %s1554_s30 = smov [#allocation7]   ;;  %s176_s28 = int_to_ptr.vmem [resolvable:$true] %s175_s28 }
   0xf   : > { %s1972_s26 = scalar_select %p1633_p8, 1, 0 }
  0x10   : > { %p1294_p9 = pneg %p1633_p8  ;;  %s191_s6 = sshll.u32 %s1554_s30, 4  ;;  %s192_s6 = int_to_ptr.vmem [resolvable:$true] %s191_s6 }
  0x11   : > { %s1414_s7 = scalar_lea.vmem %s176_s28, 1024  ;;  %p1422_p5 = scmp.lt.s32.totalorder %s176_s28, %s176_s28 }
  0x12   : > { %p1642_p11 = pnand %p1294_p9, %p1966_p1  ;;  %p1415_p13 = scmp.ne.s32.totalorder %s176_s28, %s1414_s7 }
  0x13   : > { %p1423_p7 = scmp.lt.s32.totalorder %s1414_s7, %s1414_s7 }
  0x14   : > { %p1405_p12 = pneg %p1642_p11 }
  0x15   : > { %p1424_p10 = por %p1423_p7, %p1422_p5 }
  0x16   : > { %p1417_p0 = pnand %p1415_p13, %p1405_p12 }
  0x18   : > { %p1418_p3 = pneg %p1417_p0 }
  0x1a   : > { %p1425_p9 = pnand %p1424_p10, %p1418_p3 }
  0x1c   : > { %1428 = shalt.err (!%p1425_p9)
}
  0x1d   : > { %s1965_s8 = smov 64   ;;  %s1556_s9 = smov 4  }
  0x1e   : > { %1297 = dma.hbm_to_vmem [thread:$0]  (!%p1642_p11), %s1960_s1, 1024, %s176_s28, [#allocation6], %s1965_s8, %s1965_s8, %s1556_s9  }
  0x1f   : > { %s1440_s12 = scalar_lea.vmem %s192_s6, 1024  ;;  %p1448_p10 = scmp.lt.s32.totalorder %s192_s6, %s192_s6 }
  0x20   : > { %p1441_p13 = scmp.ne.s32.totalorder %s192_s6, %s1440_s12  ;;  %p1449_p3 = scmp.lt.s32.totalorder %s1440_s12, %s1440_s12 }
  0x22   : > { %p1443_p0 = pnand %p1441_p13, %p1405_p12  ;;  %p1450_p7 = por %p1449_p3, %p1448_p10 }
  0x24   : > { %p1444_p5 = pneg %p1443_p0 }
  0x26   : > { %p1451_p9 = pnand %p1450_p7, %p1444_p5 }
  0x28   : > { %1454 = shalt.err (!%p1451_p9)
}
  0x29   : > { %1300 = dma.hbm_to_vmem [thread:$0]  (!%p1642_p11), %s1962_s3, 1024, %s192_s6, [#allocation6], %s1965_s8, %s1965_s8, %s1556_s9  }
  0x2a   : > { %s1671_s15 = sadd.s32 1, %s1551_s21   ;;  %s29_s16 = sadd.s32 1, %s1547_s20 }
  0x2b   : > { %s26_s17 = ssub.s32 %s1551_s21, %s1671_s15  ;;  %p36_p12 = scmp.ne.s32.totalorder %s1547_s20, %s1543_s19 }
  0x2c   : > { %p27_p13 = scmp.eq.s32.totalorder %s26_s17, 0  ;;  %p37_p0 = scmp.eq.s32.totalorder %s1551_s21, 0 }
  0x2d   : > { %p1681_p5 = por %p150_p2, %p36_p12  ;;  %p1311_p10 = scmp.lt.s32.totalorder %s1551_s21, 2 }
  0x2e   : > { %s1687_s27 = scalar_select %p27_p13, %s1547_s20, %s29_s16  }
  0x2f   : > { %s1974_s23 = scalar_select %p1681_p5, 1, 0 }
  0x30   : > { %p38_p3 = por %p37_p0, %p36_p12  ;;  %s208_s28 = sand.u32 1, %s1547_s20  }
  0x31   : > { %s1279_s29 = smul.u32 96, %s208_s28  ;;  %s1702_s14 = scalar_lea.sflag [#allocation3], %s208_s28 }
  0x32   : > { %s1280_s30 = smul.u32 1536, %s1551_s21  ;;  %p1691_p11 = pnand %p1311_p10, %p38_p3 }
  0x33   : > { %s212_s12 = scalar_lea.vmem [#allocation2], %s1279_s29 }
  0x34   : > { %s1698_s11 = scalar_lea.hbm %s1959_s0, %s1280_s30  ;;  %s220_s13 = sshll.u32 %s212_s12, 4  ;;  %s1700_s13 = int_to_ptr.vmem [resolvable:$true] %s220_s13 }
  0x35   : > { %s1455_s16 = scalar_lea.hbm %s1698_s11, 1536  ;;  %p1457_p7 = pneg %p1691_p11 }
  0x36   : > { %p1456_p2 = scmp.ne.s32.totalorder %s1698_s11, %s1455_s16  ;;  %s1460_s30 = scalar_lea.hbm %s1959_s0, 3072 }
  0x37   : > { %p1461_p13 = scmp.lt.s32.totalorder %s1698_s11, %s1959_s0  ;;  %p1462_p0 = scmp.lt.s32.totalorder %s1460_s30, %s1455_s16 }
  0x38   : > { %p1458_p9 = pnand %p1457_p7, %p1456_p2 }
  0x39   : > { %p1463_p10 = por %p1462_p0, %p1461_p13 }
  0x3a   : > { %p1459_p12 = pneg %p1458_p9 }
  0x3c   : > { %p1464_p3 = pnand %p1463_p10, %p1459_p12 }
  0x3e   : > { %1467 = shalt.err (!%p1464_p3)
}
  0x3f   : > { %s1468_s28 = scalar_lea.vmem %s1700_s13, 1536  ;;  %s1557_s29 = smov [#allocation2]  }
  0x40   : > { %p1469_p1 = scmp.ne.s32.totalorder %s1700_s13, %s1468_s28  ;;  %s1473_s12 = sshll.u32 %s1557_s29, 4  ;;  %s1474_s12 = int_to_ptr.vmem [resolvable:$false] %s1473_s12 }
  0x41   : > { %s1475_s17 = scalar_lea.vmem %s1474_s12, 3072  ;;  %p1476_p9 = scmp.lt.s32.totalorder %s1700_s13, %s1474_s12 }
  0x42   : > { %p1471_p6 = pnand %p1469_p1, %p1457_p7  ;;  %p1477_p5 = scmp.lt.s32.totalorder %s1475_s17, %s1468_s28 }
  0x44   : > { %p1472_p2 = pneg %p1471_p6  ;;  %p1478_p4 = por %p1477_p5, %p1476_p9 }
  0x46   : > { %p1479_p8 = pnand %p1478_p4, %p1472_p2 }
  0x48   : > { %1482 = shalt.err (!%p1479_p8)
}
  0x49   : > { %s1976_s8 = smov 64   ;;  %p1977_p1 = scmp.ne.s32.totalorder %s1972_s26, 0 }
  0x4a   : > { %1304 = dma.hbm_to_vmem [thread:$0]  (!%p1691_p11), %s1698_s11, 1536, %s1700_s13, %s1702_s14, %s1976_s8, %s1976_s8, %s1556_s9  }
  0x4b   : > { %232 = sbr.rel (%p1977_p1) target bundleno = 701 (0x2bd), region = 40  ;;  %s1729_s16 = sand.u32 (!%p1977_p1), 1, %s1543_s19  }
  0x4c   : > { %s1281_s7 = smul.u32 (!%p1977_p1), 96, %s1729_s16  ;;  %s235_s30 = scalar_lea.sflag (!%p1977_p1), [#allocation3], %s1729_s16 }
  0x4d   : > { %p1978_p4 = scmp.ne.s32.totalorder (!%p1977_p1), %s1970_s24, 0 }
  0x4e   : > { %s1733_s10 = scalar_lea.vmem (!%p1977_p1), [#allocation2], %s1281_s7 }
  0x50   : > { %1526 = dma.done.wait (%p1978_p4), %s235_s30, 1536  }
  0x51   : > { %1528 = vsyncadd (%p1978_p4), %s235_s30, 4294965760  ;;  %p1979_p6 = scmp.eq.s32.totalorder %s1614_s22, 0 }
  0x53   : > { %1530 = dma.done.wait (%p1979_p6), [#allocation6], 2048   ;;  %p1980_p8 = pmov %p1979_p6 }
  0x54   : > { %vm363_vm0 = vsmask.f32 7424  ;;  %v1744_v0 = vld [vmem:[%s1733_s10] sm:$0xff]   ;;  %v1356_v1 = vld [vmem:[%s1733_s10 + $0x8] ss:$0 sps:$4 sm:$0xff]   ;;  %vm476_vm1 = vcmask 1046528  }
  0x55   : > { %1532 = vsyncadd (%p1980_p8), [#allocation6], 4294965248  ;;  %v1748_v2 = vld [vmem:[%s1733_s10 + $0xc] sm:$0xff]   ;;  %v477_v3 = vrot.slane %v1744_v0, 1  ;;  %v478_v4 = vrot.slane %v1356_v1, 1  ;;  %v365_v5 = vshrl.u32 %v1744_v0, 16 }
  0x56   : > { %v367_v6 = vshll.u32 %v1744_v0, 16  ;;  %v1358_v7 = vld [vmem:[%s1733_s10 + $0x14] ss:$0 sps:$4 sm:$0xff]   ;;  %v372_v8 = vshll.u32 %v1356_v1, 16  ;;  %v480_v9 = vrot.slane %v1748_v2, 1  ;;  %v377_v10 = vshrl.u32 %v1748_v2, 16 }
  0x57   : > { %v379_v11 = vshll.u32 %v1748_v2, 16  ;;  %v479_v12 = vsel %vm476_vm1, %v477_v3, %v478_v4  ;;  %v481_v14 = vrot.slane %v1358_v7, 1  ;;  %v384_v15 = vshll.u32 %v1358_v7, 16  ;;  %v1759_v16 = vld [vmem:[%s1733_s10 + $0x24] sm:$0xff]   ;;  %s1558_s24 = smov 64   ;;  %v1767_v27 = vld [vmem:[%s1733_s10 + $0x18] sm:$0xff]  }
  0x58   : > { %v369_v13 = vrot.slane %v367_v6, 1  ;;  %501 = vrot.lane.b32.xlu1 %v479_v12, %s1558_s24  ;;  %v374_v17 = vrot.slane %v372_v8, 1  ;;  %v1360_v19 = vld [vmem:[%s1733_s10 + $0x2c] ss:$0 sps:$4 sm:$0xff]   ;;  %v401_v24 = vshrl.u32 %v1759_v16, 16  ;;  %v403_v25 = vshll.u32 %v1759_v16, 16 }
  0x59   : > { %v381_v18 = vrot.slane %v379_v11, 1  ;;  %v482_v21 = vsel %vm476_vm1, %v480_v9, %v481_v14  ;;  %v386_v22 = vrot.slane %v384_v15, 1  ;;  %v408_v26 = vshll.u32 %v1360_v19, 16  ;;  %v1362_v29 = vld [vmem:[%s1733_s10 + $0x20] ss:$0 sps:$4 sm:$0xff]   ;;  %s1559_s26 = smov 32  }
  0x5a   : > { %v370_v20 = vor.u32 %v369_v13, %v365_v5  ;;  %v1772_v30 = vld [vmem:[%s1733_s10 + $0x3c] sm:$0xff]   ;;  %v405_v31 = vrot.slane %v403_v25, 1  ;;  %v486_v33 = vrot.slane %v1759_v16, 1  ;;  %v487_v34 = vrot.slane %v1360_v19, 1  ;;  %v1781_v39 = vld [vmem:[%s1733_s10 + $0x30] sm:$0xff]   ;;  %v1798_v61 = vld [vmem:[%s1733_s10 + $0x48] sm:$0xff]  }
  0x5b   : > { %v382_v23 = vor.u32 %v381_v18, %v377_v10  ;;  %v410_v32 = vrot.slane %v408_v26, 1  ;;  %v389_v36 = vshrl.u32 %v1767_v27, 16  ;;  %v391_v37 = vshll.u32 %v1767_v27, 16  ;;  %v1364_v42 = vld [vmem:[%s1733_s10 + $0x44] ss:$0 sps:$4 sm:$0xff]   ;;  %v1788_v47 = vld [vmem:[%s1733_s10 + $0x54] sm:$0xff]  }
  0x5c   : > { %v375_v28 = vsel %vm363_vm0, %v370_v20, %v374_v17  ;;  %503 = vrot.lane.b32.xlu1 %v482_v21, %s1558_s24  ;;  %v396_v38 = vshll.u32 %v1362_v29, 16  ;;  %v406_v40 = vor.u32 %v405_v31, %v401_v24  ;;  %v483_v41 = vrot.slane %v1767_v27, 1  ;;  %v1366_v51 = vld [vmem:[%s1733_s10 + $0x38] ss:$0 sps:$4 sm:$0xff]   ;;  %v1372_v62 = vld [vmem:[#allocation5 + $0x30] sm:$0xff]   ;;  %v1373_v6 = vld [vmem:[#allocation5 + $0x28] sm:$0xff]  }
  0x5d   : > { %460 = vrot.lane.b32.xlu0 %v375_v28, %s1559_s26  ;;  %v387_v35 = vsel %vm363_vm0, %v382_v23, %v386_v22  ;;  %v425_v43 = vshrl.u32 %v1772_v30, 16  ;;  %v427_v44 = vshll.u32 %v1772_v30, 16  ;;  %v393_v45 = vrot.slane %v391_v37, 1  ;;  %v1371_v56 = vld [vmem:[#allocation5 + $0x38] sm:$0xff]   ;;  %v1370_v14 = vld [vmem:[%s1733_s10 + $0x50] ss:$0 sps:$4 sm:$0xff]  }
  0x5e   : > { %v398_v46 = vrot.slane %v396_v38, 1  ;;  %v411_v48 = vsel %vm363_vm0, %v406_v40, %v410_v32  ;;  %v432_v50 = vshll.u32 %v1364_v42, 16  ;;  %v484_v53 = vrot.slane %v1362_v29, 1  ;;  %1227 = vmatprep.subr.bf16.mxu0 %v1371_v56  ;;  %v1368_v5 = vld [vmem:[%s1733_s10 + $0x5c] ss:$0 sps:$4 sm:$0xff]   ;;  %v1374_v25 = vld [vmem:[#allocation5 + $0x20] sm:$0xff]  }
  0x5f   : > { %v429_v49 = vrot.slane %v427_v44, 1  ;;  %v394_v52 = vor.u32 %v393_v45, %v389_v36  ;;  %v413_v54 = vshrl.u32 %v1781_v39, 16  ;;  %v415_v55 = vshll.u32 %v1781_v39, 16  ;;  %1228 = vmatpush3.bf16.msra.mxu0 %v1371_v56  ;;  %v1376_v40 = vld [vmem:[#allocation5 + $0x10] sm:$0xff]   ;;  %v1377_v44 = vld [vmem:[#allocation5 + $0x8] sm:$0xff]   ;;  %v1378_v45 = vld [vmem:[#allocation5] sm:$0xff]  }
  0x60   : > { %466 = vrot.lane.b32.xlu1 %v411_v48, %s1559_s26  ;;  %v488_v57 = vsel %vm476_vm1, %v486_v33, %v487_v34  ;;  %v434_v59 = vrot.slane %v432_v50, 1  ;;  %v420_v60 = vshll.u32 %v1366_v51, 16  ;;  %v492_v3 = vrot.slane %v1772_v30, 1  ;;  %1229 = vmatprep.subr.bf16.mxu0 %v1372_v62  ;;  %s1155_s14 = sshll.u32 %s1729_s16, 3  ;;  %s1199_s28 = sshll.u32 %s1614_s22, 7 }
  0x61   : > { %462 = vrot.lane.b32.xlu0 %v387_v35, %s1559_s26  ;;  %v430_v58 = vor.u32 %v429_v49, %v425_v43  ;;  %v399_v63 = vsel %vm363_vm0, %v394_v52, %v398_v46  ;;  %v417_v1 = vrot.slane %v415_v55, 1  ;;  %v493_v4 = vrot.slane %v1364_v42, 1  ;;  %v1375_v35 = vld [vmem:[#allocation5 + $0x18] sm:$0xff]   ;;  %s272_s29 = scalar_lea.vmem [#allocation8], %s1155_s14  ;;  %s1921_s7 = scalar_lea.hbm %s1964_s5, %s1199_s28 }
  0x62   : > { %v485_v7 = vsel %vm476_vm1, %v483_v41, %v484_v53  ;;  %v422_v9 = vrot.slane %v420_v60, 1  ;;  %v451_v10 = vshll.u32 %v1788_v47, 16  ;;  %v449_v12 = vshrl.u32 %v1788_v47, 16  ;;  %s1055_s12 = sshll.u32 %s272_s29, 4  ;;  %s1042_s22 = scalar_lea.sflag [#allocation4], %s1729_s16  ;;  %s1056_s12 = int_to_ptr.vmem [resolvable:$true] %s1055_s12 }
  0x63   : > { %v418_v8 = vor.u32 %v417_v1, %v413_v54  ;;  %v435_v11 = vsel %vm363_vm0, %v430_v58, %v434_v59  ;;  %v456_v13 = vshll.u32 %v1368_v5, 16  ;;  %v439_v15 = vshll.u32 %v1798_v61, 16  ;;  %1230 = vmatpush3.bf16.msra.mxu0 %v1372_v62  ;;  %s1483_s30 = scalar_lea.vmem %s1056_s12, 128  ;;  %p1981_p11 = scmp.ne.s32.totalorder %s1974_s23, 0 }
  0x64   : > { %507 = vrot.lane.b32.xlu1 %v488_v57, %s1558_s24  ;;  %v489_v17 = vrot.slane %v1781_v39, 1  ;;  %v453_v18 = vrot.slane %v451_v10, 1  ;;  %v490_v19 = vrot.slane %v1366_v51, 1  ;;  %v437_v20 = vshrl.u32 %v1798_v61, 16  ;;  %1231 = vmatprep.subr.bf16.mxu0 %v1373_v6  ;;  %p1484_p5 = scmp.ne.s32.totalorder %s1056_s12, %s1483_s30  ;;  %s1562_s10 = smov [#allocation8]  }
  0x65   : > { %464 = vrot.lane.b32.xlu0 %v399_v63, %s1559_s26  ;;  %v441_v21 = vrot.slane %v439_v15, 1  ;;  %v498_v22 = vrot.slane %v1788_v47, 1  ;;  %v423_v23 = vsel %vm363_vm0, %v418_v8, %v422_v9  ;;  %v444_v24 = vshll.u32 %v1370_v14, 16  ;;  %v1383_v15 = vld [vmem:[#allocation7 + $0x18] sm:$0xff]  }
  0x66   : > { %v494_v26 = vsel %vm476_vm1, %v492_v3, %v493_v4  ;;  %v454_v28 = vor.u32 %v453_v18, %v449_v12  ;;  %v458_v29 = vrot.slane %v456_v13, 1  ;;  %v499_v31 = vrot.slane %v1368_v5, 1  ;;  %v1379_v12 = vld [vmem:[#allocation7 + $0x38] sm:$0xff]   ;;  %v1385_v18 = vld [vmem:[#allocation7 + $0x8] sm:$0xff]   ;;  %p1485_p7 = pnand %p1484_p5, %p1981_p11 }
  0x67   : > { %1232 = vmatpush3.bf16.msra.mxu0 %v1373_v6  ;;  %v491_v32 = vsel %vm476_vm1, %v489_v17, %v490_v19  ;;  %v442_v33 = vor.u32 %v441_v21, %v437_v20  ;;  %v446_v34 = vrot.slane %v444_v24, 1  ;;  %v495_v37 = vrot.slane %v1798_v61, 1  ;;  %v1384_v17 = vld [vmem:[#allocation7 + $0x10] sm:$0xff]   ;;  %v1386_v19 = vld [vmem:[#allocation7] sm:$0xff]  }
  0x68   : > { %470 = vrot.lane.b32.xlu1 %v435_v11, %s1559_s26  ;;  %1233 = vmatprep.subr.bf16.mxu0 %v1374_v25  ;;  %v459_v36 = vsel %vm363_vm0, %v454_v28, %v458_v29  ;;  %v496_v38 = vrot.slane %v1370_v14, 1  ;;  %v500_v42 = vsel %vm476_vm1, %v498_v22, %v499_v31  ;;  %vm517_vm2 = vcmask 261120   ;;  %v1380_v14 = vld [vmem:[#allocation7 + $0x30] sm:$0xff]   ;;  %p1486_p12 = pneg %p1485_p7 }
  0x69   : > { %505 = vrot.lane.b32.xlu0 %v485_v7, %s1558_s24  ;;  %v447_v41 = vsel %vm363_vm0, %v442_v33, %v446_v34  ;;  %vm534_vm3 = vcmask 523264   ;;  %vm551_vm4 = vcmask 785408   ;;  %v1560_v13 = vmov 0.0  }
  0x6a   : > { %v497_v43 = vsel %vm476_vm1, %v495_v37, %v496_v38  ;;  %1259 = vmatprep.subr.bf16.mxu1 %v1560_v13  ;;  %vm1561_vm5 = vmmov 0   ;;  %v730_v20 = vlaneseq  ;;  %vm882_vm7 = vcmask 1041409  }
  0x6b   : > { %1234 = vmatpush3.bf16.msra.mxu0 %v1374_v25  ;;  %1260 = vmatpush3.bf16.msra.mxu1 %v1379_v12  ;;  %vm885_vm8 = vcmask 1042434   ;;  %vm888_vm9 = vcmask 1043459   ;;  %vm891_vm10 = vcmask 1044484   ;;  %vm894_vm11 = vcmask 1045509  }
  0x6c   : > { %511 = vrot.lane.b32.xlu1 %v494_v26, %s1558_s24  ;;  %1235 = vmatprep.subr.bf16.mxu0 %v1375_v35  ;;  %v731_v21 = vshrl.u32 %v730_v20, 7  ;;  %vm897_vm12 = vcmask 1046534   ;;  %vm900_vm13 = vcmask 1047559  }
  0x6d   : > { %468 = vrot.lane.b32.xlu0 %v423_v23, %s1559_s26  ;;  %1261 = vmatprep.subr.bf16.mxu1 %v1560_v13 }
  0x6e   : > { %1275 = vmatprep.mubr.msk.bf16.mxu1 %vm1561_vm5, %v1560_v13  ;;  %v1863_v22 = vadd.s32 8, %v731_v21 }
  0x6f   : > { %1236 = vmatpush3.bf16.msra.mxu0 %v1375_v35  ;;  %1262 = vmatpush3.bf16.msra.mxu1 %v1380_v14 }
  0x70   : > { %474 = vrot.lane.b32.xlu1 %v459_v36, %s1559_s26  ;;  %1237 = vmatprep.subr.bf16.mxu0 %v1376_v40  ;;  %vm734_vm6 = vcmp.lt.s32.totalorder %v1863_v22, 10 }
  0x71   : > { %509 = vrot.lane.b32.xlu0 %v491_v32, %s1558_s24  ;;  %1263 = vmatprep.subr.bf16.mxu1 %v1560_v13 }
  0x73   : > { %1238 = vmatpush3.bf16.msra.mxu0 %v1376_v40 }
  0x74   : > { %515 = vrot.lane.b32.xlu1 %v500_v42, %s1558_s24  ;;  %1239 = vmatprep.subr.bf16.mxu0 %v1377_v44 }
  0x75   : > { %472 = vrot.lane.b32.xlu0 %v447_v41, %s1559_s26 }
  0x77   : > { %1240 = vmatpush3.bf16.msra.mxu0 %v1377_v44 }
  0x78   : > { %1241 = vmatprep.subr.bf16.mxu0 %v1378_v45 }
  0x79   : > { %513 = vrot.lane.b32.xlu0 %v497_v43, %s1558_s24  ;;  %s1487_s24 = sshll.u32 %s1562_s10, 4  ;;  %s1488_s24 = int_to_ptr.vmem [resolvable:$false] %s1487_s24 }
  0x7a   : > { %s1489_s26 = scalar_lea.vmem %s1488_s24, 256  ;;  %p1490_p13 = scmp.lt.s32.totalorder %s1056_s12, %s1488_s24 }
  0x7b   : > { %1242 = vmatpush3.bf16.msra.mxu0 %v1378_v45  ;;  %p1491_p0 = scmp.lt.s32.totalorder %s1489_s26, %s1483_s30 }
  0x7d   : > { %p1492_p10 = por %p1491_p0, %p1490_p13 }
  0x7f   : > { %p1493_p3 = pnand %p1492_p10, %p1486_p12 }
  0xca   : > { %v502_v46 = vpop.permute.xlu1 %501 }
  0xce   : > { %v504_v49 = vpop.permute.xlu1 %503 }
  0xcf   : > { %v461_v48 = vpop.permute.xlu0 %460 }
  0xd0   : > { %v519_v50 = vsel %vm517_vm2, %v1744_v0, %v461_v48 }
  0xd1   : > { %v536_v51 = vsel %vm534_vm3, %v519_v50, %v502_v46 }
  0xd2   : > { %1243 = vmatprep.mubr.msk.bf16.mxu0 %vm551_vm4, %v536_v51  ;;  %v467_v54 = vpop.permute.xlu1 %466 }
  0xd3   : > { %v463_v52 = vpop.permute.xlu0 %462  ;;  %v525_v58 = vsel %vm517_vm2, %v1759_v16, %v467_v54 }
  0xd4   : > { %v521_v53 = vsel %vm517_vm2, %v1748_v2, %v463_v52 }
  0xd5   : > { %v538_v55 = vsel %vm534_vm3, %v521_v53, %v504_v49 }
  0xd6   : > { %1244 = vmatmul.mubr.msk.bf16.vlgmr.msra.gmra.mxu0 %vm551_vm4, %v538_v55  ;;  %v508_v57 = vpop.permute.xlu1 %507 }
  0xd7   : > { %v465_v56 = vpop.permute.xlu0 %464  ;;  %v542_v63 = vsel %vm534_vm3, %v525_v58, %v508_v57 }
  0xd8   : > { %v523_v0 = vsel %vm517_vm2, %v1767_v27, %v465_v56 }
  0xda   : > { %v471_v62 = vpop.permute.xlu1 %470 }
  0xdb   : > { %v506_v59 = vpop.permute.xlu0 %505  ;;  %v529_v3 = vsel %vm517_vm2, %v1772_v30, %v471_v62 }
  0xdc   : > { %v540_v60 = vsel %vm534_vm3, %v523_v0, %v506_v59 }
  0xdd   : > { %1247 = vmatprep.mubr.msk.bf16.mxu0 %vm551_vm4, %v540_v60 }
  0xde   : > { %1248 = vmatmul.mubr.msk.bf16.gmra.mxu0 %vm551_vm4, %v542_v63  ;;  %v512_v1 = vpop.permute.xlu1 %511 }
  0xdf   : > { %v469_v2 = vpop.permute.xlu0 %468  ;;  %v546_v6 = vsel %vm534_vm3, %v529_v3, %v512_v1 }
  0xe0   : > { %v527_v16 = vsel %vm517_vm2, %v1781_v39, %v469_v2 }
  0xe2   : > { %v475_v5 = vpop.permute.xlu1 %474 }
  0xe3   : > { %v510_v4 = vpop.permute.xlu0 %509  ;;  %v533_v8 = vsel %vm517_vm2, %v1788_v47, %v475_v5  ;;  %v1381_v47 = vld [vmem:[#allocation7 + $0x28] sm:$0xff]  }
  0xe4   : > { %v544_v27 = vsel %vm534_vm3, %v527_v16, %v510_v4  ;;  %1264 = vmatpush3.bf16.msra.mxu1 %v1381_v47  ;;  %v1188_v4 = vld [vmem:[%s1961_s2] ss:$0 sm:$0xff] }
  0xe5   : > { %1251 = vmatprep.mubr.msk.bf16.mxu0 %vm551_vm4, %v544_v27  ;;  %1265 = vmatprep.subr.bf16.mxu1 %v1560_v13 }
  0xe6   : > { %1252 = vmatmul.mubr.msk.bf16.gmra.mxu0 %vm551_vm4, %v546_v6  ;;  %v516_v9 = vpop.permute.xlu1 %515 }
  0xe7   : > { %v473_v7 = vpop.permute.xlu0 %472  ;;  %v550_v11 = vsel %vm534_vm3, %v533_v8, %v516_v9 }
  0xe8   : > { %v531_v30 = vsel %vm517_vm2, %v1798_v61, %v473_v7  ;;  %v1382_v61 = vld [vmem:[#allocation7 + $0x20] sm:$0xff]  }
  0xe9   : > { %1266 = vmatpush3.bf16.msra.mxu1 %v1382_v61 }
  0xea   : > { %1267 = vmatprep.subr.bf16.mxu1 %v1560_v13 }
  0xeb   : > { %v514_v10 = vpop.permute.xlu0 %513 }
  0xec   : > { %v548_v39 = vsel %vm534_vm3, %v531_v30, %v514_v10 }
  0xed   : > { %1255 = vmatprep.mubr.msk.bf16.mxu0 %vm551_vm4, %v548_v39  ;;  %1268 = vmatpush3.bf16.msra.mxu1 %v1383_v15 }
  0xee   : > { %1256 = vmatmul.mubr.msk.bf16.gmra.mxu0 %vm551_vm4, %v550_v11  ;;  %1269 = vmatprep.subr.bf16.mxu1 %v1560_v13 }
  0xf1   : > { %1270 = vmatpush3.bf16.msra.mxu1 %v1384_v17 }
  0xf2   : > { %1271 = vmatprep.subr.bf16.mxu1 %v1560_v13 }
  0xf5   : > { %1272 = vmatpush3.bf16.msra.mxu1 %v1385_v18 }
  0xf6   : > { %1273 = vmatprep.subr.bf16.mxu1 %v1560_v13 }
  0xf9   : > { %1274 = vmatpush3.bf16.msra.mxu1 %v1386_v19 }
 0x196   : > { %v1245_v23 = vpop.f32.mrf.mxu0 }
 0x198   : > { %v667_v24 = vpop.f32.mrf.mxu0 }
 0x19a   : > { %v1246_v25 = vpop.f32.mrf.mxu0 }
 0x19b   : > { %v742_v26 = vsel %vm734_vm6, %v1246_v25, -1e+30 }
 0x19c   : > { %v762_v28 = vmax.f32 %v1245_v23, %v742_v26  ;;  %v670_v29 = vpop.f32.mrf.mxu0 }
 0x19d   : > { %v740_v31 = vsel %vm734_vm6, %v670_v29, -1e+30 }
 0x19e   : > { %v763_v32 = vrot.slane %v762_v28, 4  ;;  %v755_v33 = vmax.f32 %v667_v24, %v740_v31  ;;  %v1249_v34 = vpop.f32.mrf.mxu0 }
 0x1a0   : > { %v764_v35 = vmax.f32 %v762_v28, %v763_v32  ;;  %v756_v36 = vrot.slane %v755_v33, 4  ;;  %v683_v37 = vpop.f32.mrf.mxu0 }
 0x1a2   : > { %v765_v38 = vrot.slane %v764_v35, 2  ;;  %v757_v40 = vmax.f32 %v755_v33, %v756_v36  ;;  %v1250_v41 = vpop.f32.mrf.mxu0 }
 0x1a3   : > { %v746_v42 = vsel %vm734_vm6, %v1250_v41, -1e+30 }
 0x1a4   : > { %v776_v43 = vmax.f32 %v1249_v34, %v746_v42  ;;  %v686_v44 = vpop.f32.mrf.mxu0  ;;  %v766_v45 = vmax.f32 %v764_v35, %v765_v38  ;;  %v758_v46 = vrot.slane %v757_v40, 2 }
 0x1a5   : > { %v744_v48 = vsel %vm734_vm6, %v686_v44, -1e+30 }
 0x1a6   : > { %v777_v49 = vrot.slane %v776_v43, 4  ;;  %v769_v50 = vmax.f32 %v683_v37, %v744_v48  ;;  %v1253_v51 = vpop.f32.mrf.mxu0  ;;  %v767_v55 = vrot.slane %v766_v45, 1  ;;  %v759_v56 = vmax.f32 %v757_v40, %v758_v46 }
 0x1a8   : > { %v778_v52 = vmax.f32 %v776_v43, %v777_v49  ;;  %v770_v53 = vrot.slane %v769_v50, 4  ;;  %v699_v54 = vpop.f32.mrf.mxu0  ;;  %v768_v2 = vmax.f32 %v766_v45, %v767_v55  ;;  %v760_v1 = vrot.slane %v759_v56, 1 }
 0x1aa   : > { %v779_v57 = vrot.slane %v778_v52, 2  ;;  %v771_v58 = vmax.f32 %v769_v50, %v770_v53  ;;  %v1254_v0 = vpop.f32.mrf.mxu0  ;;  %v819_v39 = vadd.f32 %v1188_v4, %v768_v2  ;;  %v761_v11 = vmax.f32 %v759_v56, %v760_v1 }
 0x1ab   : > { %v750_v59 = vsel %vm734_vm6, %v1254_v0, -1e+30 }
 0x1ac   : > { %v780_v60 = vmax.f32 %v778_v52, %v779_v57  ;;  %v772_v62 = vrot.slane %v771_v58, 2  ;;  %v702_v63 = vpop.f32.mrf.mxu0  ;;  %v790_v3 = vmax.f32 %v1253_v51, %v750_v59  ;;  %1387 = vtanh.f32 %v819_v39 }
 0x1ad   : > { %v748_v16 = vsel %vm734_vm6, %v702_v63, -1e+30  ;;  %v818_v23 = vadd.f32 %v1188_v4, %v761_v11 }
 0x1ae   : > { %v773_v27 = vmax.f32 %v771_v58, %v772_v62  ;;  %v783_v5 = vmax.f32 %v699_v54, %v748_v16  ;;  %v1257_v6 = vpop.f32.mrf.mxu0  ;;  %v781_v7 = vrot.slane %v780_v60, 1  ;;  %v791_v8 = vrot.slane %v790_v3, 4 }
 0x1b0   : > { %v774_v9 = vrot.slane %v773_v27, 1  ;;  %v784_v30 = vrot.slane %v783_v5, 4  ;;  %v715_v10 = vpop.f32.mrf.mxu0  ;;  %v792_v12 = vmax.f32 %v790_v3, %v791_v8  ;;  %v782_v61 = vmax.f32 %v780_v60, %v781_v7 }
 0x1b2   : > { %v775_v13 = vmax.f32 %v773_v27, %v774_v9  ;;  %v785_v14 = vmax.f32 %v783_v5, %v784_v30  ;;  %v1258_v47 = vpop.f32.mrf.mxu0  ;;  %v793_v15 = vrot.slane %v792_v12, 2  ;;  %v821_v31 = vadd.f32 %v1188_v4, %v782_v61 }
 0x1b3   : > { %v754_v17 = vsel %vm734_vm6, %v1258_v47, -1e+30 }
 0x1b4   : > { %v820_v18 = vadd.f32 %v1188_v4, %v775_v13  ;;  %v786_v19 = vrot.slane %v785_v14, 2  ;;  %v804_v20 = vmax.f32 %v1257_v6, %v754_v17  ;;  %v718_v21 = vpop.f32.mrf.mxu0  ;;  %v794_v24 = vmax.f32 %v792_v12, %v793_v15 }
 0x1b5   : > { %v752_v25 = vsel %vm734_vm6, %v718_v21, -1e+30 }
 0x1b6   : > { %1389 = vtanh.f32 %v820_v18  ;;  %v787_v26 = vmax.f32 %v785_v14, %v786_v19  ;;  %v805_v28 = vrot.slane %v804_v20, 4  ;;  %v797_v29 = vmax.f32 %v715_v10, %v752_v25 }
 0x1b7   : > { %v795_v32 = vrot.slane %v794_v24, 1  ;;  %1391 = vtanh.f32 %v818_v23 }
 0x1b8   : > { %v788_v33 = vrot.slane %v787_v26, 1  ;;  %v806_v34 = vmax.f32 %v804_v20, %v805_v28  ;;  %v798_v35 = vrot.slane %v797_v29, 4  ;;  %1393 = vtanh.f32 %v821_v31 }
 0x1b9   : > { %v796_v36 = vmax.f32 %v794_v24, %v795_v32  ;;  %v1885_v49 = vpop.eup %1387  ;;  %v1189_v24 = vld [vmem:[%s1963_s4] ss:$0 sm:$0xff] }
 0x1ba   : > { %v789_v37 = vmax.f32 %v787_v26, %v788_v33  ;;  %v807_v38 = vrot.slane %v806_v34, 2  ;;  %v799_v40 = vmax.f32 %v797_v29, %v798_v35  ;;  %v835_v54 = vpack.c.bf16 %v1885_v49, %v1885_v49 }
 0x1bb   : > { %v823_v41 = vadd.f32 %v1188_v4, %v796_v36 }
 0x1bc   : > { %v822_v42 = vadd.f32 %v1188_v4, %v789_v37  ;;  %v808_v43 = vmax.f32 %v806_v34, %v807_v38  ;;  %v800_v22 = vrot.slane %v799_v40, 2  ;;  %v874_v0 = vunpack.c.l.b16 %v835_v54 }
 0x1be   : > { %1395 = vtanh.f32 %v822_v42  ;;  %v809_v44 = vrot.slane %v808_v43, 1  ;;  %v801_v45 = vmax.f32 %v799_v40, %v800_v22  ;;  %v881_v3 = vrot.slane %v874_v0, 7 }
 0x1bf   : > { %1397 = vtanh.f32 %v823_v41 }
 0x1c0   : > { %v810_v46 = vmax.f32 %v808_v43, %v809_v44  ;;  %v802_v48 = vrot.slane %v801_v45, 1 }
 0x1c2   : > { %v825_v50 = vadd.f32 %v1188_v4, %v810_v46  ;;  %v803_v51 = vmax.f32 %v801_v45, %v802_v48 }
 0x1c3   : > { %v1887_v52 = vpop.eup %1389 }
 0x1c4   : > { %1399 = vtanh.f32 %v825_v50  ;;  %v824_v53 = vadd.f32 %v1188_v4, %v803_v51  ;;  %v1891_v55 = vpop.eup %1391  ;;  %v836_v56 = vpack.c.bf16 %v1887_v52, %v1887_v52 }
 0x1c5   : > { %v1394_v57 = vpop.eup %1393  ;;  %v834_v58 = vpack.c.bf16 %v1891_v55, %v1891_v55 }
 0x1c6   : > { %1401 = vtanh.f32 %v824_v53  ;;  %v875_v59 = vunpack.c.l.b16 %v836_v56  ;;  %v837_v62 = vpack.c.bf16 %v1394_v57, %v1394_v57 }
 0x1c7   : > { %v873_v1 = vunpack.c.l.b16 %v834_v58 }
 0x1c8   : > { %v884_v4 = vrot.slane %v875_v59, 6  ;;  %v876_v5 = vunpack.c.l.b16 %v837_v62 }
 0x1c9   : > { %v883_v7 = vsel %vm882_vm7, %v881_v3, %v873_v1 }
 0x1ca   : > { %v886_v9 = vsel %vm885_vm8, %v884_v4, %v883_v7  ;;  %v887_v11 = vrot.slane %v876_v5, 5 }
 0x1cb   : > { %v1396_v60 = vpop.eup %1395 }
 0x1cc   : > { %v1398_v63 = vpop.eup %1397  ;;  %v838_v2 = vpack.c.bf16 %v1396_v60, %v1396_v60  ;;  %v889_v14 = vsel %vm888_vm9, %v887_v11, %v886_v9 }
 0x1cd   : > { %v839_v27 = vpack.c.bf16 %v1398_v63, %v1398_v63 }
 0x1ce   : > { %v877_v16 = vunpack.c.l.b16 %v838_v2 }
 0x1cf   : > { %v878_v39 = vunpack.c.l.b16 %v839_v27 }
 0x1d0   : > { %v890_v30 = vrot.slane %v877_v16, 4 }
 0x1d1   : > { %v1400_v6 = vpop.eup %1399  ;;  %v893_v15 = vrot.slane %v878_v39, 3 }
 0x1d2   : > { %v841_v8 = vpack.c.bf16 %v1400_v6, %v1400_v6  ;;  %v892_v61 = vsel %vm891_vm10, %v890_v30, %v889_v14 }
 0x1d3   : > { %v1402_v10 = vpop.eup %1401  ;;  %v895_v18 = vsel %vm894_vm11, %v893_v15, %v892_v61 }
 0x1d4   : > { %v840_v12 = vpack.c.bf16 %v1402_v10, %v1402_v10  ;;  %v880_v13 = vunpack.c.l.b16 %v841_v8 }
 0x1d6   : > { %v879_v47 = vunpack.c.l.b16 %v840_v12  ;;  %v899_v19 = vrot.slane %v880_v13, 1 }
 0x1d8   : > { %v896_v17 = vrot.slane %v879_v47, 2 }
 0x1da   : > { %v898_v20 = vsel %vm897_vm12, %v896_v17, %v895_v18 }
 0x1db   : > { %v901_v21 = vsel %vm900_vm13, %v899_v19, %v898_v20 }
 0x1dc   : > { %v902_v23 = vpack.c.b16 %v901_v21, %v901_v21 }
 0x1de   : > { %1276 = vmatmul.mubr.bf16.vlgmr.msra.gmra.mxu1 %v902_v23 }
 0x29e   : > { %v986_v25 = vpop.f32.mrf.mxu1 }
 0x29f   : > { %v987_v26 = vadd.f32 %v1189_v24, %v986_v25 }
 0x2a0   : > { %v1277_v28 = vpop.f32.mrf.mxu1 }
 0x2a1   : > { %v992_v29 = vmax.f32 %v987_v26, 0.0 }
 0x2a2   : > { %v989_v31 = vpop.f32.mrf.mxu1 }
 0x2a3   : > { %v994_v32 = vrot.slane %v992_v29, 1  ;;  %v995_v33 = vrot.slane %v992_v29, 2  ;;  %v996_v34 = vrot.slane %v992_v29, 3  ;;  %v997_v35 = vrot.slane %v992_v29, 4 }
 0x2a4   : > { %v1278_v36 = vpop.f32.mrf.mxu1  ;;  %v998_v37 = vrot.slane %v992_v29, 5  ;;  %v999_v38 = vrot.slane %v992_v29, 6  ;;  %v1000_v40 = vrot.slane %v992_v29, 7  ;;  %v1009_v44 = vadd.f32 %v1891_v55, %v992_v29 }
 0x2a5   : > { %v1010_v41 = vadd.f32 %v1885_v49, %v994_v32  ;;  %v1011_v42 = vadd.f32 %v1887_v52, %v995_v33  ;;  %v1012_v43 = vadd.f32 %v1394_v57, %v996_v34  ;;  %v1013_v22 = vadd.f32 %v1396_v60, %v997_v35 }
 0x2a6   : > { %v1014_v45 = vadd.f32 %v1398_v63, %v998_v37  ;;  %v1015_v50 = vadd.f32 %v1402_v10, %v999_v38  ;;  %v1016_v51 = vadd.f32 %v1400_v6, %v1000_v40 }
 0x2a7   : > { %v1025_v46 = vrot.slane %v1010_v41, 7  ;;  %v1027_v48 = vrot.slane %v1011_v42, 6  ;;  %v1029_v54 = vrot.slane %v1012_v43, 5  ;;  %v1031_v58 = vrot.slane %v1013_v22, 4 }
 0x2a8   : > { %v1033_v0 = vrot.slane %v1014_v45, 3  ;;  %v1035_v55 = vrot.slane %v1015_v50, 2  ;;  %v1037_v59 = vrot.slane %v1016_v51, 1 }
 0x2a9   : > { %v1026_v53 = vsel %vm882_vm7, %v1025_v46, %v1009_v44 }
 0x2aa   : > { %v1028_v56 = vsel %vm885_vm8, %v1027_v48, %v1026_v53 }
 0x2ab   : > { %v1030_v49 = vsel %vm888_vm9, %v1029_v54, %v1028_v56 }
 0x2ac   : > { %v1032_v52 = vsel %vm891_vm10, %v1031_v58, %v1030_v49 }
 0x2ad   : > { %v1034_v57 = vsel %vm894_vm11, %v1033_v0, %v1032_v52 }
 0x2ae   : > { %v1036_v60 = vsel %vm897_vm12, %v1035_v55, %v1034_v57 }
 0x2af   : > { %v1038_v62 = vsel %vm900_vm13, %v1037_v59, %v1036_v60 }
 0x2b0   : > { %1040 = vst [vmem:[%s272_s29] sm:$0xff] %v1038_v62 }
 0x2b1   : > { %1496 = shalt.err (!%p1493_p3)
}
 0x2b2   : > { %s1497_s9 = scalar_lea.hbm %s1921_s7, 128  ;;  %s1501_s11 = scalar_lea.hbm %s1964_s5, 256 }
 0x2b3   : > { %p1498_p2 = scmp.ne.s32.totalorder %s1921_s7, %s1497_s9  ;;  %p1502_p4 = scmp.lt.s32.totalorder %s1921_s7, %s1964_s5 }
 0x2b4   : > { %p1503_p6 = scmp.lt.s32.totalorder %s1501_s11, %s1497_s9 }
 0x2b5   : > { %p1499_p9 = pnand %p1498_p2, %p1981_p11 }
 0x2b6   : > { %p1504_p8 = por %p1503_p6, %p1502_p4 }
 0x2b7   : > { %p1500_p1 = pneg %p1499_p9 }
 0x2b9   : > { %p1505_p5 = pnand %p1504_p8, %p1500_p1 }
 0x2bb   : > { %1508 = shalt.err (!%p1505_p5)
}
 0x2bc   : > { %1292 = dma.vmem_to_hbm [thread:$0]  (%p1981_p11), %s1056_s12, 128, %s1921_s7, %s1042_s22  }
 0x2bd PF: > { %s1067_s28 = sand.u32 1, %s1539_s18   ;;  %p1982_p7 = scmp.ne.s32.totalorder %s1971_s25, 0 }
 0x2be   : > { %p1983_p12 = scmp.ge.s32.totalorder %s1551_s21, 2  ;;  %s1068_s29 = scalar_lea.sflag [#allocation4], %s1067_s28 }
 0x2c0   : > { %p1306_p13 = pnand %p1983_p12, %p1982_p7 }
 0x2c2   : > { %p1307_p0 = pneg %p1306_p13 }
 0x2c4   : > { %1534 = dma.done.wait (%p1307_p0), %s1068_s29, 128  }
 0x2c5   : > { %1536 = vsyncadd (%p1307_p0), %s1068_s29, 4294967168  ;;  %p19_p10 = scmp.ge.s32.totalorder %s1671_s15, 4   ;;  %s1984_s18 = smov %s1543_s19 }
 0x2c6   : > { %s1985_s19 = smov %s1547_s20  ;;  %s1986_s20 = smov %s1687_s27 }
 0x2c7   : > { %s1987_s21 = smov %s1671_s15  ;;  %21 = sbr.rel (!%p19_p10) target bundleno = 6 (0x6), region = 93 }
 0x2cc   :  { %1073 = vsyncpa [#allocation3], 1 }
 0x2cd   :  { %1075 = vsyncpa [#allocation3 + $0x1], 1 }
 0x2ce   :  { %1076 = vsyncpa [#allocation6], 1 }
 0x2cf   :  { %1077 = vsyncpa [#allocation4], 1 }
 0x2d0   :  { %1079 = vsyncpa [#allocation4 + $0x1], 1 }

</bundles_post_ra>
